<compile_context>
chip_gen: v7x
topology: tpu7x:2x2x1
jax: 0.10.0
libtpu: 0.0.40
codegen_flags: <defaults>
</compile_context>

<pallas_src>
import functools

import jax
import jax.numpy as jnp
from jax import lax
from jax.experimental import pallas as pl
from jax.experimental.pallas import tpu as pltpu


# ----------------------------------------------------------------------------
# Hardware queries (robust fallbacks so the kernel runs on any TPU generation).
# ----------------------------------------------------------------------------
def _vmem_capacity_bytes():
    try:
        info = pltpu.get_tpu_info()
        v = getattr(info, "vmem_capacity_bytes", None)
        if isinstance(v, int) and v > 0:
            return v
    except Exception:
        pass
    return 64 * 1024 * 1024  # conservative default (v7x-sized)


def _tensorcores_per_chip():
    try:
        info = pltpu.get_tpu_info()
        for name in ("num_cores", "core_count", "num_tensorcores",
                     "tensorcores_per_chip"):
            v = getattr(info, name, None)
            if isinstance(v, int) and 1 <= v <= 8:
                return v
    except Exception:
        pass
    try:
        kind = jax.devices()[0].device_kind.lower().replace(" ", "")
        if "v7" in kind or "tpu7" in kind:
            return 2
    except Exception:
        pass
    return 1


# ----------------------------------------------------------------------------
# Kernel
# ----------------------------------------------------------------------------
def _contrastive_loss_kernel(x1_ref, x2_ref, lab_ref, out_ref, acc_ref, *,
                             margin, total_b, tile_b, steps_per_core,
                             first_masked_block, needs_mask, use_mxu_reduce):
    c = pl.program_id(0)          # core index   ("parallel")
    i = pl.program_id(1)          # batch step   ("arbitrary" reduction)

    @pl.when(i == 0)
    def _():
        acc_ref[...] = jnp.zeros_like(acc_ref)

    # Compute in f32 for accuracy (matches F.normalize on f32 references).
    x1 = x1_ref[...].astype(jnp.float32)          # (TB, D)
    x2 = x2_ref[...].astype(jnp.float32)          # (TB, D)
    lab = lab_ref[...].astype(jnp.float32)        # (TB, 1)

    d_dim = x1.shape[-1]

    if use_mxu_reduce:
        # Small/medium D: do the row-sums on the (otherwise idle) MXU instead
        # of the XLU.  HIGHEST precision keeps f32-level accuracy.
        ones_col = jnp.ones((d_dim, 1), jnp.float32)

        def rowsum(v):
            return jnp.dot(v, ones_col,
                           precision=lax.Precision.HIGHEST,
                           preferred_element_type=jnp.float32)
    else:
        def rowsum(v):
            return jnp.sum(v, axis=-1, keepdims=True)

    # F.normalize(x, p=2, dim=1, eps=1e-12): x / max(||x||, 1e-12)
    #   == x * rsqrt(max(||x||^2, 1e-24))
    s1 = rowsum(x1 * x1)                                  # (TB, 1)
    s2 = rowsum(x2 * x2)                                  # (TB, 1)
    inv1 = lax.rsqrt(jnp.maximum(s1, 1e-24))
    inv2 = lax.rsqrt(jnp.maximum(s2, 1e-24))

    # F.pairwise_distance(a, b, p=2, eps=1e-6, keepdim=True)
    diff = x1 * inv1 - x2 * inv2 + 1e-6                   # (TB, D)
    d2 = rowsum(diff * diff)                              # (TB, 1) == d^2
    d = jnp.sqrt(d2)

    term = lab * d2 + (1.0 - lab) * jnp.square(
        jnp.maximum(margin - d, 0.0))                     # (TB, 1)

    if needs_mask:
        g = c * steps_per_core + i                        # logical block index

        @pl.when(g < first_masked_block)
        def _():
            acc_ref[...] += jnp.sum(term, axis=0, keepdims=True)

        @pl.when(g >= first_masked_block)
        def _():
            # Only tiles that can contain rows >= B pay for the mask.
            row = lax.broadcasted_iota(jnp.int32, term.shape, 0) + g * tile_b
            masked = jnp.where(row < total_b, term, 0.0)
            acc_ref[...] += jnp.sum(masked, axis=0, keepdims=True)
    else:
        acc_ref[...] += jnp.sum(term, axis=0, keepdims=True)

    @pl.when(i == pl.num_programs(1) - 1)
    def _():
        out_ref[0] = acc_ref[...]       # per-core partial sum (not yet mean)


# ----------------------------------------------------------------------------
# Tile sizing (byte-based, generation-aware, no row cap)
# ----------------------------------------------------------------------------
def _pick_batch_tile(B, D, in_itemsize, budget_bytes):
    """Largest batch tile whose full VMEM footprint fits `budget_bytes`."""
    lane_d = max(int(pl.cdiv(D, 128)) * 128, 128)   # last dim pads to 128 lanes
    # Per-batch-row VMEM bytes:
    #   2 inputs x 2 pipeline buffers (input dtype)
    #   labels block: 2 buffers, lane-padded to 128 lanes, 4 B worst case
    #   f32 compute working set (upcasts / diff): ~3 rows of lane_d f32
    per_row = 4 * lane_d * in_itemsize + 2 * 128 * 4 + 3 * lane_d * 4
    sub = max(8, 32 // max(in_itemsize, 1))         # dtype sublane multiple
    max_tb = max(sub, budget_bytes // per_row)
    if max_tb >= B:
        return B                                    # full extent — always legal
    return max(sub, (int(max_tb) // sub) * sub)


# ----------------------------------------------------------------------------
# Wrapper
# ----------------------------------------------------------------------------
def contrastive_loss(output1, output2, labels, margin=1.0, tile_b=None):
    """output1, output2: (B, D); labels: (B, 1). Returns scalar f32 loss."""
    B, D = output1.shape
    assert output2.shape == (B, D)
    assert labels.shape == (B, 1)

    vmem_cap = _vmem_capacity_bytes()
    # ~96 MiB on 128 MiB chips (v5e/v6e), ~48 MiB on 64 MiB chips (v7x).
    vmem_limit = int(min((vmem_cap * 3) // 4, 112 * 1024 * 1024))
    budget = int(vmem_limit * 0.85)          # headroom for compiler scratch

    if tile_b is None:
        TB = _pick_batch_tile(B, D, output1.dtype.itemsize, budget)
    else:
        TB = int(tile_b)
    TB = min(TB, B)

    total_blocks = int(pl.cdiv(B, TB))
    C = max(1, min(_tensorcores_per_chip(), total_blocks))
    steps = int(pl.cdiv(total_blocks, C))
    last_block = total_blocks - 1

    # First logical block that can contain rows >= B (padded / duplicate rows).
    first_masked_block = B // TB
    needs_mask = (C * steps - 1) >= first_masked_block

    def in_map(c, i):
        # Clamp so duplicate tail blocks (when C*steps > total_blocks) re-read
        # the last valid block; their rows are masked out anyway.
        return (jnp.minimum(c * steps + i, last_block), 0)

    kernel = functools.partial(
        _contrastive_loss_kernel,
        margin=float(margin), total_b=B, tile_b=TB, steps_per_core=steps,
        first_masked_block=first_masked_block, needs_mask=needs_mask,
        use_mxu_reduce=(D <= 512),
    )

    out = pl.pallas_call(
        kernel,
        out_shape=jax.ShapeDtypeStruct((C, 1, 1), jnp.float32),
        grid_spec=pltpu.PrefetchScalarGridSpec(
            num_scalar_prefetch=0,
            grid=(C, steps),
            in_specs=[
                pl.BlockSpec((TB, D), in_map),
                pl.BlockSpec((TB, D), in_map),
                pl.BlockSpec((TB, 1), in_map),
            ],
            out_specs=pl.BlockSpec((1, 1, 1), lambda c, i: (c, 0, 0)),
            scratch_shapes=[pltpu.VMEM((1, 1), jnp.float32)],
        ),
        compiler_params=pltpu.CompilerParams(
            dimension_semantics=("parallel", "arbitrary"),
            vmem_limit_bytes=vmem_limit,
        ),
    )(output1, output2, labels)

    # Combine per-core partial sums and take the mean over the true batch.
    return jnp.sum(out) / B


# ----------------------------------------------------------------------------
# Pure-JAX reference (mirrors the PyTorch module)
# ----------------------------------------------------------------------------
def _reference(output1, output2, labels, margin=1.0):
    x1 = output1.astype(jnp.float32)
    x2 = output2.astype(jnp.float32)
    lab = labels.astype(jnp.float32)
    n1 = x1 / jnp.maximum(jnp.linalg.norm(x1, axis=1, keepdims=True), 1e-12)
    n2 = x2 / jnp.maximum(jnp.linalg.norm(x2, axis=1, keepdims=True), 1e-12)
    d = jnp.sqrt(jnp.sum(jnp.square(n1 - n2 + 1e-6), axis=-1, keepdims=True))
    return jnp.mean(lab * d ** 2 + (1.0 - lab) * jnp.maximum(margin - d, 0.0) ** 2)


if __name__ == "__main__":
    key = jax.random.PRNGKey(0)
    k1, k2, k3 = jax.random.split(key, 3)

    # Small shapes consistent with the module's forward: (B, D) embeddings.
    B, D = 8, 32
    output1 = jax.random.normal(k1, (B, D), dtype=jnp.float32)
    output2 = jax.random.normal(k2, (B, D), dtype=jnp.float32)
    labels = jax.random.bernoulli(k3, 0.5, (B, 1)).astype(jnp.float32)

    loss = contrastive_loss(output1, output2, labels, margin=1.0)
    loss = jax.block_until_ready(loss)
    ref = _reference(output1, output2, labels, margin=1.0)
    assert jnp.allclose(loss, ref, atol=1e-5, rtol=1e-5), (loss, ref)

    # Second check exercising the multi-tile + ragged-last-tile (masking) path.
    B2, D2 = 20, 32
    ka, kb, kc = jax.random.split(jax.random.PRNGKey(1), 3)
    o1 = jax.random.normal(ka, (B2, D2), dtype=jnp.float32)
    o2 = jax.random.normal(kb, (B2, D2), dtype=jnp.float32)
    lb = jax.random.bernoulli(kc, 0.5, (B2, 1)).astype(jnp.float32)
    loss2 = jax.block_until_ready(
        contrastive_loss(o1, o2, lb, margin=1.0, tile_b=8))
    ref2 = _reference(o1, o2, lb, margin=1.0)
    assert jnp.allclose(loss2, ref2, atol=1e-5, rtol=1e-5), (loss2, ref2)

    print("KERNEL_OK")
</pallas_src>

<mosaic_0001>
module attributes {stable_mosaic.version = 11 : i64} {
  func.func @_contrastive_loss_kernel(%arg0: i32, %arg1: i32, %arg2: memref<8x32xf32, #tpu.memory_space<vmem>>, %arg3: memref<8x32xf32, #tpu.memory_space<vmem>>, %arg4: memref<8x1xf32, #tpu.memory_space<vmem>>, %arg5: memref<1x1x1xf32, #tpu.memory_space<vmem>>, %arg6: memref<1x1xf32, #tpu.memory_space<vmem>>) attributes {dimension_semantics = [#tpu.dimension_semantics<parallel>, #tpu.dimension_semantics<arbitrary>], iteration_bounds = array<i64: 1, 1>, scalar_prefetch = 0 : i64, scratch_operands = 1 : i64, tpu.core_type = #tpu.core_type<tc>, window_params = [{transform_indices = @transform_0, window_bounds = array<i64: 8, 32>}, {transform_indices = @transform_1, window_bounds = array<i64: 8, 32>}, {transform_indices = @transform_2, window_bounds = array<i64: 8, 1>}, {transform_indices = @transform_3, window_bounds = array<i64: 1, 1, 1>}]} {
    %c0_i32 = arith.constant 0 : i32
    %0 = arith.cmpi eq, %arg1, %c0_i32 : i32
    %1 = arith.extui %0 : i1 to i32
    %c0_i32_0 = arith.constant 0 : i32
    %2 = arith.cmpi ne, %1, %c0_i32_0 : i32
    scf.if %2 {
      %cst_22 = arith.constant 0.000000e+00 : f32
      %45 = vector.broadcast %cst_22 : f32 to vector<1x1xf32>
      %c0_23 = arith.constant 0 : index
      %c0_24 = arith.constant 0 : index
      %46 = vector.load %arg6[%c0_23, %c0_24] : memref<1x1xf32, #tpu.memory_space<vmem>>, vector<1x1xf32>
      tpu.vector_store %arg6[%c0_23, %c0_24], %45 {strides = array<i32>} : memref<1x1xf32, #tpu.memory_space<vmem>>, vector<1x1xf32>,
    } else {
    }
    %c0 = arith.constant 0 : index
    %c0_1 = arith.constant 0 : index
    %3 = vector.load %arg2[%c0, %c0_1] : memref<8x32xf32, #tpu.memory_space<vmem>>, vector<8x32xf32>
    %c0_2 = arith.constant 0 : index
    %c0_3 = arith.constant 0 : index
    %4 = vector.load %arg3[%c0_2, %c0_3] : memref<8x32xf32, #tpu.memory_space<vmem>>, vector<8x32xf32>
    %c0_4 = arith.constant 0 : index
    %c0_5 = arith.constant 0 : index
    %5 = vector.load %arg4[%c0_4, %c0_5] : memref<8x1xf32, #tpu.memory_space<vmem>>, vector<8x1xf32>
    %cst = arith.constant 1.000000e+00 : f32
    %6 = vector.broadcast %cst : f32 to vector<32x1xf32>
    %7 = arith.mulf %3, %3 : vector<8x32xf32>
    %cst_6 = arith.constant dense<0.000000e+00> : vector<8x1xf32>
    %8 = tpu.matmul %7, %6, %cst_6 {dimension_numbers = #tpu.dot_dimension_numbers<[1], [0], [0], [1], [0, 0, 1, 1], [], []>, precision = #tpu.contract_precision<fp32>} : vector<8x32xf32>, vector<32x1xf32>, vector<8x1xf32> -> vector<8x1xf32>
    %9 = arith.mulf %4, %4 : vector<8x32xf32>
    %cst_7 = arith.constant dense<0.000000e+00> : vector<8x1xf32>
    %10 = tpu.matmul %9, %6, %cst_7 {dimension_numbers = #tpu.dot_dimension_numbers<[1], [0], [0], [1], [0, 0, 1, 1], [], []>, precision = #tpu.contract_precision<fp32>} : vector<8x32xf32>, vector<32x1xf32>, vector<8x1xf32> -> vector<8x1xf32>
    %cst_8 = arith.constant 1.000000e-24 : f32
    %11 = vector.broadcast %cst_8 : f32 to vector<8x1xf32>
    %12 = arith.maximumf %8, %11 : vector<8x1xf32>
    %13 = math.rsqrt %12 : vector<8x1xf32>
    %cst_9 = arith.constant 1.000000e-24 : f32
    %14 = vector.broadcast %cst_9 : f32 to vector<8x1xf32>
    %15 = arith.maximumf %10, %14 : vector<8x1xf32>
    %16 = math.rsqrt %15 : vector<8x1xf32>
    %17 = vector.broadcast %13 : vector<8x1xf32> to vector<8x32xf32>
    %18 = arith.mulf %3, %17 : vector<8x32xf32>
    %19 = vector.broadcast %16 : vector<8x1xf32> to vector<8x32xf32>
    %20 = arith.mulf %4, %19 : vector<8x32xf32>
    %21 = arith.subf %18, %20 : vector<8x32xf32>
    %cst_10 = arith.constant 9.99999997E-7 : f32
    %22 = vector.broadcast %cst_10 : f32 to vector<8x32xf32>
    %23 = arith.addf %21, %22 : vector<8x32xf32>
    %24 = arith.mulf %23, %23 : vector<8x32xf32>
    %cst_11 = arith.constant dense<0.000000e+00> : vector<8x1xf32>
    %25 = tpu.matmul %24, %6, %cst_11 {dimension_numbers = #tpu.dot_dimension_numbers<[1], [0], [0], [1], [0, 0, 1, 1], [], []>, precision = #tpu.contract_precision<fp32>} : vector<8x32xf32>, vector<32x1xf32>, vector<8x1xf32> -> vector<8x1xf32>
    %26 = math.sqrt %25 : vector<8x1xf32>
    %27 = arith.mulf %5, %25 : vector<8x1xf32>
    %cst_12 = arith.constant 1.000000e+00 : f32
    %28 = vector.broadcast %cst_12 : f32 to vector<8x1xf32>
    %29 = arith.subf %28, %5 : vector<8x1xf32>
    %cst_13 = arith.constant 1.000000e+00 : f32
    %30 = vector.broadcast %cst_13 : f32 to vector<8x1xf32>
    %31 = arith.subf %30, %26 : vector<8x1xf32>
    %cst_14 = arith.constant 0.000000e+00 : f32
    %32 = vector.broadcast %cst_14 : f32 to vector<8x1xf32>
    %33 = arith.maximumf %31, %32 : vector<8x1xf32>
    %34 = arith.mulf %33, %33 : vector<8x1xf32>
    %35 = arith.mulf %29, %34 : vector<8x1xf32>
    %36 = arith.addf %27, %35 : vector<8x1xf32>
    %c0_15 = arith.constant 0 : index
    %c0_16 = arith.constant 0 : index
    %37 = vector.load %arg6[%c0_15, %c0_16] : memref<1x1xf32, #tpu.memory_space<vmem>>, vector<1x1xf32>
    %cst_17 = arith.constant dense<0.000000e+00> : vector<1xf32>
    %38 = vector.multi_reduction <add>, %36, %cst_17 [0] : vector<8x1xf32> to vector<1xf32>
    %39 = vector.shape_cast %38 : vector<1xf32> to vector<1x1xf32>
    %40 = arith.addf %37, %39 : vector<1x1xf32>
    %c0_18 = arith.constant 0 : index
    %c0_19 = arith.constant 0 : index
    %41 = vector.load %arg6[%c0_18, %c0_19] : memref<1x1xf32, #tpu.memory_space<vmem>>, vector<1x1xf32>
    tpu.vector_store %arg6[%c0_18, %c0_19], %40 {strides = array<i32>} : memref<1x1xf32, #tpu.memory_space<vmem>>, vector<1x1xf32>,
    %c0_i32_20 = arith.constant 0 : i32
    %42 = arith.cmpi eq, %arg1, %c0_i32_20 : i32
    %43 = arith.extui %42 : i1 to i32
    %c0_i32_21 = arith.constant 0 : i32
    %44 = arith.cmpi ne, %43, %c0_i32_21 : i32
    scf.if %44 {
      %c0_22 = arith.constant 0 : index
      %c0_23 = arith.constant 0 : index
      %45 = vector.load %arg6[%c0_22, %c0_23] : memref<1x1xf32, #tpu.memory_space<vmem>>, vector<1x1xf32>
      %c0_24 = arith.constant 0 : index
      %c0_25 = arith.constant 0 : index
      %c0_26 = arith.constant 0 : index
      %46 = vector.load %arg5[%c0_24, %c0_25, %c0_26] : memref<1x1x1xf32, #tpu.memory_space<vmem>>, vector<1x1x1xf32>
      %47 = vector.shape_cast %46 : vector<1x1x1xf32> to vector<1x1xf32>
      %48 = vector.shape_cast %45 : vector<1x1xf32> to vector<1x1x1xf32>
      tpu.vector_store %arg5[%c0_24, %c0_25, %c0_26], %48 {strides = array<i32>} : memref<1x1x1xf32, #tpu.memory_space<vmem>>, vector<1x1x1xf32>,
    } else {
    }
    return
  }
  func.func @transform_0(%arg0: i32, %arg1: i32) -> (i32, i32) {
    %c1_i32 = arith.constant 1 : i32
    %0 = arith.muli %arg0, %c1_i32 : i32
    %1 = arith.addi %0, %arg1 : i32
    %c0_i32 = arith.constant 0 : i32
    %2 = arith.minsi %1, %c0_i32 : i32
    %c0_i32_0 = arith.constant 0 : i32
    %c0_i32_1 = arith.constant 0 : i32
    return %2, %c0_i32_0 : i32, i32
  }
  func.func @transform_1(%arg0: i32, %arg1: i32) -> (i32, i32) {
    %c1_i32 = arith.constant 1 : i32
    %0 = arith.muli %arg0, %c1_i32 : i32
    %1 = arith.addi %0, %arg1 : i32
    %c0_i32 = arith.constant 0 : i32
    %2 = arith.minsi %1, %c0_i32 : i32
    %c0_i32_0 = arith.constant 0 : i32
    %c0_i32_1 = arith.constant 0 : i32
    return %2, %c0_i32_0 : i32, i32
  }
  func.func @transform_2(%arg0: i32, %arg1: i32) -> (i32, i32) {
    %c1_i32 = arith.constant 1 : i32
    %0 = arith.muli %arg0, %c1_i32 : i32
    %1 = arith.addi %0, %arg1 : i32
    %c0_i32 = arith.constant 0 : i32
    %2 = arith.minsi %1, %c0_i32 : i32
    %c0_i32_0 = arith.constant 0 : i32
    %c0_i32_1 = arith.constant 0 : i32
    return %2, %c0_i32_0 : i32, i32
  }
  func.func @transform_3(%arg0: i32, %arg1: i32) -> (i32, i32, i32) {
    %c0_i32 = arith.constant 0 : i32
    %c0_i32_0 = arith.constant 0 : i32
    %c0_i32_1 = arith.constant 0 : i32
    return %arg0, %c0_i32, %c0_i32_0 : i32, i32, i32
  }
}

</mosaic_0001>

<bundles_post_ra>
// kernel: tpu_custom_call.1
= control target key start
LH: loop header
LB: loop body
LE: loop exit
PB: predicated region body
PF: predicated region fallthrough
CT: control target
= control target key end

     0   :  { %8 = vsyncpa [#allocation4], 0  ;;  %s1984_s0 = inlined_call_operand.vmem [shape: f32[8,32], index: 0, kind: input, shape index: {}]   ;;  %s1985_s1 = inlined_call_operand.hbm [shape: f32[8,32], index: 1, kind: input, shape index: {}]   ;;  %s1986_s2 = inlined_call_operand.vmem [shape: f32[8,1], index: 2, kind: input, shape index: {}]   ;;  %s1987_s3 = inlined_call_operand.hbm [shape: f32[1,1,1], index: 3, kind: output, shape index: {}]  }
   0x1   :  { %9 = vsyncpa [#allocation5], 0  ;;  %s1820_s12 = smov [#allocation3]   ;;  %s1772_s16 = scalar_lea.hbm %s1985_s1, 128 }
   0x2   :  { %s33_s13 = sshll.u32 %s1820_s12, 4  ;;  %p1773_p0 = scmp.ne.s32.totalorder %s1985_s1, %s1772_s16  ;;  %s34_s13 = int_to_ptr.vmem [resolvable:$true] %s33_s13 }
   0x3   :  { %p1776_p1 = scmp.lt.u32.totalorder %s1772_s16, %s1985_s1 }
   0x5   :  { %p1778_p2 = pnand %p1776_p1, %p1773_p0 }
   0x7   :  { %1781 = shalt.err (!%p1778_p2)
}
   0x8   :  { %s1782_s21 = scalar_lea.vmem %s34_s13, 128  ;;  %p1787_p4 = scmp.lt.s32.totalorder %s34_s13, %s34_s13 }
   0x9   :  { %p1783_p3 = scmp.ne.s32.totalorder %s34_s13, %s1782_s21  ;;  %p1788_p5 = scmp.lt.s32.totalorder %s1782_s21, %s1782_s21 }
   0xb   :  { %p1789_p6 = por %p1788_p5, %p1787_p4 }
   0xd   :  { %p1790_p7 = pnand %p1789_p6, %p1783_p3 }
   0xf   :  { %1793 = shalt.err (!%p1790_p7)
}
  0x10   :  { %36 = dma.hbm_to_vmem [thread:$0]  %s1985_s1, 128, %s34_s13, [#allocation4]  }
  0x11   :  { %1816 = dma.done.wait [#allocation4], 128  }
  0x12   :  { %1817 = vsyncadd [#allocation4], 4294967168  ;;  %v1821_v0 = vmov 0.0   ;;  %v1822_v1 = vmov 0.0|0.0   ;;  %vm1823_vm0 = vmmov 0   ;;  %v1872_v3 = vld [vmem:[%s1984_s0] sm:$0xff] }
  0x13   :  { %1562 = vmatprep.subr.mxu0 %v1821_v0  ;;  %1695 = vmatprep.subr.bf16.mxu1 %v1822_v1  ;;  %v1824_v2 = vmov 1.0|1.0   ;;  %v1874_v4 = vld [vmem:[#allocation3] sm:$0xff]  ;;  %vm99_vm1 = vcmask 261120   ;;  %v98_v5 = vmul.f32 %v1872_v3, %v1872_v3  ;;  %v1825_v19 = vmov 0   ;;  %s1826_s26 = smov [#allocation6]  }
  0x14   :  { %1563 = vmatpush3.msra.mxu0 %v1821_v0  ;;  %1564 = vmatprep.mubr.msk.f32.mxu0 %vm1823_vm0, %v1821_v0  ;;  %v536_v7 = vmul.f32 %v1874_v4, %v1874_v4  ;;  %vm93_vm2 = vcmask 0   ;;  %v97_v58 = vld [vmem:[%s1986_s2] sm:$0xff]  ;;  %vm1443_vm5 = vcmask 7168   ;;  %s1465_s2 = sshll.u32 %s1826_s26, 4  ;;  %s1466_s2 = int_to_ptr.vmem [resolvable:$true] %s1465_s2 }
  0x15   :  { %1696 = vmatpush3.bf16.msra.mxu1 %v1824_v2  ;;  %1567 = vmatprep.subr.mxu0 %v1821_v0  ;;  %v101_v6 = vsel %vm99_vm1, %v98_v5, 0  ;;  %94 = vst.msk [vmem:[#allocation2] sm:$0x1] %vm93_vm2, %v1821_v0  ;;  %v1436_v59 = vsub.f32 1.0, %v97_v58  ;;  %s1794_s27 = scalar_lea.vmem %s1466_s2, 16  ;;  %s1798_s28 = scalar_lea.vmem %s1466_s2, 32 }
  0x16   :  { %1697 = vmatprep.subr.bf16.mxu1 %v1822_v1  ;;  %1559 = vmatprep.mubr.msk.f32.mxu1 %vm1823_vm0, %v1821_v0  ;;  %v168_v8 = vand.u32 4294901760, %v101_v6  ;;  %v538_v10 = vsel %vm99_vm1, %v536_v7, 0  ;;  %p1795_p8 = scmp.ne.s32.totalorder %s1466_s2, %s1794_s27  ;;  %p1799_p9 = scmp.lt.s32.totalorder %s1466_s2, %s1466_s2 }
  0x17   :  { %v605_v12 = vand.u32 4294901760, %v538_v10  ;;  %1765 = vset.pattern.permute.xlu0 %v1825_v19  ;;  %p1800_p10 = scmp.lt.s32.totalorder %s1798_s28, %s1794_s27 }
  0x18   :  { %1565 = vmatmul.mubr.f32.vlgmr.msra.gmra.mrb[0].mxu0 %v168_v8  ;;  %v169_v9 = vsub.f32 %v101_v6, %v168_v8 }
  0x19   :  { %1698 = vmatpush3.bf16.msra.mxu1 %v1824_v2  ;;  %1568 = vmatpush3.msra.mxu0 %v1821_v0  ;;  %v606_v15 = vsub.f32 %v538_v10, %v605_v12  ;;  %p1801_p11 = por %p1800_p10, %p1799_p9 }
  0x1a   :  { %1699 = vmatprep.subr.bf16.mxu1 %v1822_v1  ;;  %1569 = vmatprep.mubr.msk.f32.mxu0 %vm1823_vm0, %v1821_v0  ;;  %v170_v11 = vand.u32 4294901760, %v169_v9 }
  0x1b   :  { %1583 = vmatprep.subr.mxu0 %v1821_v0  ;;  %v607_v16 = vand.u32 4294901760, %v606_v15  ;;  %p1802_p12 = pnand %p1801_p11, %p1795_p8 }
  0x1c   :  { %v171_v13 = vsub.f32 %v169_v9, %v170_v11  ;;  %v1442_v7 = vld [vmem:[#allocation2] sm:$0x1] }
  0x1d   :  { %v608_v17 = vsub.f32 %v606_v15, %v607_v16 }
  0x1e   :  { %v172_v14 = vand.u32 4294901760, %v171_v13 }
  0x1f   :  { %v609_v18 = vand.u32 4294901760, %v608_v17 }
  0x20   :  { %1560 = vmatmul.mubr.f32.vlgmr.msra.gmra.mrb[0].mxu1 %v172_v14  ;;  %1570 = vmatmul.mubr.f32.vlgmr.msra.gmra.mrb[0].mxu0 %v169_v9 }
  0x21   :  { %1700 = vmatpush3.bf16.msra.mxu1 %v1824_v2  ;;  %1584 = vmatpush3.msra.mxu0 %v1821_v0 }
  0x22   :  { %1701 = vmatprep.subr.bf16.mxu1 %v1822_v1  ;;  %1585 = vmatprep.mubr.msk.f32.mxu0 %vm1823_vm0, %v1821_v0 }
  0x23   :  { %1703 = vmatprep.subr.bf16.mxu0 %v1822_v1  ;;  %1580 = vmatprep.mubr.msk.f32.mxu1 %vm1823_vm0, %v1821_v0 }
  0x24   :  { %1586 = vmatmul.mubr.f32.vlgmr.msra.gmra.mrb[2].mxu0 %v168_v8 }
  0x25   :  { %1702 = vmatpush3.bf16.msra.mxu1 %v1824_v2  ;;  %1704 = vmatpush3.bf16.msra.mxu0 %v1824_v2 }
  0x26   :  { %1707 = vmatprep.subr.bf16.mxu1 %v1822_v1  ;;  %1705 = vmatprep.subr.bf16.mxu0 %v1822_v1 }
  0x27   :  { %1596 = vmatprep.mubr.msk.f32.mxu0 %vm1823_vm0, %v1821_v0 }
  0x28   :  { %1581 = vmatmul.mubr.f32.vlgmr.msra.gmra.mrb[2].mxu1 %v170_v11 }
  0x29   :  { %1708 = vmatpush3.bf16.msra.mxu1 %v1824_v2  ;;  %1706 = vmatpush3.bf16.msra.mxu0 %v1824_v2 }
  0x2a   :  { %1709 = vmatprep.subr.bf16.mxu1 %v1822_v1  ;;  %1607 = vmatprep.mubr.msk.f32.mxu1 %vm1823_vm0, %v1821_v0 }
  0x2b   :  { %1719 = vmatprep.subr.bf16.mxu0 %v1822_v1 }
  0x2c   :  { %1597 = vmatmul.mubr.f32.vlgmr.msra.gmra.mrb[2].mxu0 %v168_v8 }
  0x2d   :  { %1710 = vmatpush3.bf16.msra.mxu1 %v1824_v2  ;;  %1720 = vmatpush3.bf16.msra.mxu0 %v1824_v2 }
  0x2e   :  { %1610 = vmatprep.subr.mxu1 %v1821_v0  ;;  %1721 = vmatprep.subr.bf16.mxu0 %v1822_v1 }
  0x2f   :  { %1655 = vmatprep.mubr.msk.f32.mxu0 %vm1823_vm0, %v1821_v0 }
  0x30   :  { %1608 = vmatmul.mubr.f32.vlgmr.msra.gmra.mrb[4].mxu1 %v609_v18 }
  0x31   :  { %1611 = vmatpush3.msra.mxu1 %v1821_v0  ;;  %1612 = vmatprep.mubr.msk.f32.mxu1 %vm1823_vm0, %v1821_v0 }
  0x32   :  { %1615 = vmatprep.subr.mxu1 %v1821_v0  ;;  %1722 = vmatpush3.bf16.msra.mxu0 %v1824_v2 }
  0x33   :  { %1658 = vmatprep.subr.mxu0 %v1821_v0 }
  0x38   :  { %1613 = vmatmul.mubr.f32.vlgmr.msra.gmra.mrb[4].mxu1 %v605_v12 }
  0x39   :  { %1616 = vmatpush3.msra.mxu1 %v1821_v0  ;;  %1617 = vmatprep.mubr.msk.f32.mxu1 %vm1823_vm0, %v1821_v0 }
  0x3a   :  { %1711 = vmatprep.subr.bf16.mxu1 %v1822_v1 }
  0x40   :  { %1618 = vmatmul.mubr.f32.vlgmr.msra.gmra.mrb[4].mxu1 %v606_v15 }
  0x41   :  { %1712 = vmatpush3.bf16.msra.mxu1 %v1824_v2  ;;  %1628 = vmatprep.mubr.msk.f32.mxu1 %vm1823_vm0, %v1821_v0 }
  0x42   :  { %1713 = vmatprep.subr.bf16.mxu1 %v1822_v1 }
  0x45   :  { %1714 = vmatpush3.bf16.msra.mxu1 %v1824_v2 }
  0x46   :  { %1631 = vmatprep.subr.mxu1 %v1821_v0 }
  0x48   :  { %1629 = vmatmul.mubr.f32.vlgmr.msra.gmra.mrb[4].mxu1 %v607_v16 }
  0x49   :  { %1632 = vmatpush3.msra.mxu1 %v1821_v0  ;;  %1633 = vmatprep.mubr.msk.f32.mxu1 %vm1823_vm0, %v1821_v0 }
  0x4a   :  { %1715 = vmatprep.subr.bf16.mxu1 %v1822_v1 }
  0x50   :  { %1634 = vmatmul.mubr.f32.vlgmr.msra.gmra.mrb[4].mxu1 %v605_v12 }
  0x51   :  { %1716 = vmatpush3.bf16.msra.mxu1 %v1824_v2  ;;  %1644 = vmatprep.mubr.msk.f32.mxu1 %vm1823_vm0, %v1821_v0 }
  0x52   :  { %1717 = vmatprep.subr.bf16.mxu1 %v1822_v1 }
  0x55   :  { %1718 = vmatpush3.bf16.msra.mxu1 %v1824_v2 }
  0x58   :  { %1645 = vmatmul.mubr.f32.vlgmr.msra.gmra.mrb[4].mxu1 %v605_v12 }
  0xf3   :  { %v174_v20 = vpop.f32.mrb[0].mxu1  ;;  %v317_v21 = vpop.f32.mrb[0].mxu0 }
  0xf4   :  { %v1731_v22 = vadd.f32 %v317_v21, %v174_v20  ;;  %v1561_v23 = vpop.f32.mrb[1].mxu1  ;;  %v1571_v24 = vpop.f32.mrb[1].mxu0 }
  0xfb   :  { %v390_v25 = vpop.f32.mrb[2].mxu1 }
  0xfc   :  { %v1732_v26 = vadd.f32 %v1731_v22, %v390_v25  ;;  %v1582_v27 = vpop.f32.mrb[3].mxu1 }
  0xff   :  { %v532_v28 = vpop.f32.mrb[2].mxu0 }
 0x100   :  { %v1733_v29 = vadd.f32 %v1732_v26, %v532_v28  ;;  %v1598_v30 = vpop.f32.mrb[3].mxu0 }
 0x102   :  { %v973_v31 = vmax.f32 %v1733_v29, 1e-24 }
 0x104   :  { %1766 = vrsqrt.f32 %v973_v31 }
 0x10e   :  { %v1767_v32 = vpop.eup %1766 }
 0x10f   :  { %979 = vperm.xlu0 %1765, %v1767_v32  }
 0x12b   :  { %v969_v33 = vpop.f32.mrb[4].mxu1 }
 0x12c   :  { %v975_v34 = vmax.f32 %v969_v33, 1e-24  ;;  %v1646_v35 = vpop.f32.mrb[5].mxu1 }
 0x12e   :  { %1768 = vrsqrt.f32 %v975_v34 }
 0x138   :  { %v1769_v36 = vpop.eup %1768 }
 0x139   :  { %985 = vperm.xlu0 %1765, %v1769_v36  }
 0x18e   :  { %v980_v37 = vpop.permute.xlu0 %979 }
 0x18f   :  { %v982_v39 = vmul.f32 %v980_v37, %v1872_v3 }
 0x1b8   :  { %v986_v38 = vpop.permute.xlu0 %985 }
 0x1b9   :  { %v988_v40 = vmul.f32 %v986_v38, %v1874_v4 }
 0x1bb   :  { %v989_v41 = vsub.f32 %v982_v39, %v988_v40 }
 0x1bd   :  { %v990_v42 = vadd.f32 1e-06, %v989_v41 }
 0x1bf   :  { %v991_v43 = vmul.f32 %v990_v42, %v990_v42 }
 0x1c1   :  { %v993_v44 = vsel %vm99_vm1, %v991_v43, 0 }
 0x1c2   :  { %v1060_v45 = vand.u32 4294901760, %v993_v44 }
 0x1c4   :  { %v1061_v46 = vsub.f32 %v993_v44, %v1060_v45 }
 0x1c6   :  { %v1062_v47 = vand.u32 4294901760, %v1061_v46 }
 0x1c8   :  { %v1063_v48 = vsub.f32 %v1061_v46, %v1062_v47 }
 0x1ca   :  { %v1064_v49 = vand.u32 4294901760, %v1063_v48 }
 0x1cc   :  { %1656 = vmatmul.mubr.f32.vlgmr.msra.gmra.mrb[4].mxu0 %v1064_v49 }
 0x1cd   :  { %1659 = vmatpush3.msra.mxu0 %v1821_v0  ;;  %1660 = vmatprep.mubr.msk.f32.mxu0 %vm1823_vm0, %v1821_v0 }
 0x1ce   :  { %1663 = vmatprep.subr.mxu0 %v1821_v0 }
 0x1d4   :  { %1661 = vmatmul.mubr.f32.vlgmr.msra.gmra.mrb[4].mxu0 %v1060_v45 }
 0x1d5   :  { %1664 = vmatpush3.msra.mxu0 %v1821_v0  ;;  %1665 = vmatprep.mubr.msk.f32.mxu0 %vm1823_vm0, %v1821_v0 }
 0x1d6   :  { %1723 = vmatprep.subr.bf16.mxu0 %v1822_v1 }
 0x1dc   :  { %1666 = vmatmul.mubr.f32.vlgmr.msra.gmra.mrb[4].mxu0 %v1061_v46 }
 0x1dd   :  { %1724 = vmatpush3.bf16.msra.mxu0 %v1824_v2  ;;  %1676 = vmatprep.mubr.msk.f32.mxu0 %vm1823_vm0, %v1821_v0 }
 0x1de   :  { %1725 = vmatprep.subr.bf16.mxu0 %v1822_v1 }
 0x1e1   :  { %1726 = vmatpush3.bf16.msra.mxu0 %v1824_v2 }
 0x1e2   :  { %1679 = vmatprep.subr.mxu0 %v1821_v0 }
 0x1e4   :  { %1677 = vmatmul.mubr.f32.vlgmr.msra.gmra.mrb[4].mxu0 %v1062_v47 }
 0x1e5   :  { %1680 = vmatpush3.msra.mxu0 %v1821_v0  ;;  %1681 = vmatprep.mubr.msk.f32.mxu0 %vm1823_vm0, %v1821_v0 }
 0x1e6   :  { %1727 = vmatprep.subr.bf16.mxu0 %v1822_v1 }
 0x1ec   :  { %1682 = vmatmul.mubr.f32.vlgmr.msra.gmra.mrb[4].mxu0 %v1060_v45 }
 0x1ed   :  { %1728 = vmatpush3.bf16.msra.mxu0 %v1824_v2  ;;  %1692 = vmatprep.mubr.msk.f32.mxu0 %vm1823_vm0, %v1821_v0 }
 0x1ee   :  { %1729 = vmatprep.subr.bf16.mxu0 %v1822_v1 }
 0x1f1   :  { %1730 = vmatpush3.bf16.msra.mxu0 %v1824_v2 }
 0x1f4   :  { %1693 = vmatmul.mubr.f32.vlgmr.msra.gmra.mrb[4].mxu0 %v1060_v45 }
 0x2c7   :  { %v1424_v50 = vpop.f32.mrb[4].mxu0 }
 0x2c8   :  { %1770 = vrsqrt.f32 %v1424_v50  ;;  %v1694_v51 = vpop.f32.mrb[5].mxu0  ;;  %vm1430_vm3 = vcmp.eq.f32.partialorder %v1424_v50, inf  ;;  %v1433_v54 = vand.u32 2147483648, %v1424_v50  ;;  %vm1432_vm4 = vcmp.eq.f32.partialorder %v1424_v50, 0.0 }
 0x2c9   :  { %v1435_v62 = vmul.f32 %v1424_v50, %v97_v58 }
 0x2d2   :  { %v1771_v52 = vpop.eup %1770 }
 0x2d3   :  { %v1429_v53 = vmul.f32 %v1771_v52, %v1424_v50 }
 0x2d5   :  { %v1431_v55 = vsel %vm1430_vm3, %v1424_v50, %v1429_v53 }
 0x2d6   :  { %v1434_v56 = vsel %vm1432_vm4, %v1433_v54, %v1431_v55 }
 0x2d7   :  { %v1437_v57 = vsub.f32 1.0, %v1434_v56 }
 0x2d9   :  { %v1438_v60 = vmax.f32 %v1437_v57, 0.0 }
 0x2db   :  { %v1439_v61 = vmul.f32 %v1438_v60, %v1438_v60 }
 0x2dd   :  { %v1440_v63 = vmul.f32 %v1439_v61, %v1436_v59 }
 0x2df   :  { %v1441_v0 = vadd.f32 %v1440_v63, %v1435_v62 }
 0x2e1   :  { %v1444_v1 = vsel %vm1443_vm5, %v1441_v0, 0.0 }
 0x2e2   :  { %v1445_v2 = vrot.slane %v1444_v1, 4 }
 0x2e4   :  { %v1446_v3 = vadd.f32 %v1445_v2, %v1444_v1 }
 0x2e6   :  { %v1447_v4 = vrot.slane %v1446_v3, 2 }
 0x2e8   :  { %v1448_v5 = vadd.f32 %v1447_v4, %v1446_v3 }
 0x2ea   :  { %v1449_v6 = vrot.slane %v1448_v5, 1 }
 0x2ec   :  { %v1450_v8 = vadd.f32 %v1449_v6, %v1448_v5 }
 0x2ee   :  { %v1451_v9 = vadd.f32 %v1450_v8, %v1442_v7 }
 0x2f0   :  { %1453 = vst.msk [vmem:[#allocation2] sm:$0x1] %vm93_vm2, %v1451_v9 }
 0x2f7   :  { %v1457_v10 = vld [vmem:[#allocation2] sm:$0x1] }
 0x2f8   :  { %1458 = vst.msk [vmem:[#allocation6] sm:$0x1] %vm93_vm2, %v1457_v10 }
 0x2f9   :  { %1805 = shalt.err (!%p1802_p12)
}
 0x2fa   :  { %s1806_s4 = scalar_lea.hbm %s1987_s3, 16 }
 0x2fb   :  { %p1807_p13 = scmp.ne.s32.totalorder %s1987_s3, %s1806_s4  ;;  %p1810_p0 = scmp.lt.u32.totalorder %s1806_s4, %s1987_s3 }
 0x2fd   :  { %p1812_p1 = pnand %p1810_p0, %p1807_p13 }
 0x2ff   :  { %1815 = shalt.err (!%p1812_p1)
}
 0x300   :  { %1468 = dma.vmem_to_hbm [thread:$0]  %s1466_s2, 16, %s1987_s3, [#allocation5]  }
 0x301   :  { %1818 = dma.done.wait [#allocation5], 16  }
 0x302   :  { %1819 = vsyncadd [#allocation5], 4294967280 }
 0x303   :  { %1472 = vsyncpa [#allocation4], 1 }
 0x304   :  { %1473 = vsyncpa [#allocation5], 1 }

</bundles_post_ra>
